<compile_context>
chip_gen: v7x
topology: tpu7x:2x2x1
jax: 0.10.0
libtpu: 0.0.40
codegen_flags: <defaults>
</compile_context>

<pallas_src>
import jax
import jax.numpy as jnp
from jax.experimental import pallas as pl
from jax.experimental.pallas import tpu as pltpu


def _dma_identity_kernel(x_hbm_ref, o_hbm_ref, sem):
    # One bulk HBM -> HBM DMA of the whole array.  Nothing flows through VMEM
    # or vregs; the DMA engine does the entire copy at HBM bandwidth.
    copy = pltpu.make_async_copy(x_hbm_ref, o_hbm_ref, sem)
    copy.start()
    copy.wait()


def _identity_copy_pallas(x: jax.Array) -> jax.Array:
    """Materialize a fresh copy of `x` via a single Pallas HBM->HBM DMA."""
    n_bytes = x.size * jnp.dtype(x.dtype).itemsize
    return pl.pallas_call(
        _dma_identity_kernel,
        out_shape=jax.ShapeDtypeStruct(x.shape, x.dtype),
        # Raw HBM refs: no auto-tiling, no VMEM staging, no grid.
        in_specs=[pl.BlockSpec(memory_space=pl.ANY)],
        out_specs=pl.BlockSpec(memory_space=pl.ANY),
        scratch_shapes=[pltpu.SemaphoreType.DMA],
        # Pure-bandwidth hint so XLA can overlap surrounding HLO ops.
        cost_estimate=pl.CostEstimate(
            flops=0, transcendentals=0, bytes_accessed=2 * n_bytes
        ),
        compiler_params=pltpu.CompilerParams(has_side_effects=True),
    )(x)


def identity_encoder(x: jax.Array, *, materialize_copy: bool = False) -> jax.Array:
    """Pallas equivalent of IdentityEncoder.forward: returns x unchanged.

    Default is the zero-cost pass-through (`return x`), which is the correct
    and fastest implementation of the module on any TPU generation.  Set
    `materialize_copy=True` to force an explicit Pallas kernel that produces
    a fresh output buffer via one bulk HBM->HBM DMA (useful for benchmarking
    or when a distinct buffer is genuinely required).
    """
    if not materialize_copy:
        return x
    if x.size == 0:
        # Nothing to copy; launching a kernel would be pure overhead.
        return x
    return _identity_copy_pallas(x)


if __name__ == "__main__":
    # IdentityEncoder(embedding_dim) has no parameters; embedding_dim only
    # sets .out_dim.  Use batch=2, seq=8, hidden=32 as the example input.
    embedding_dim = 32
    key = jax.random.PRNGKey(0)
    x = jax.random.normal(key, (2, 8, embedding_dim), dtype=jnp.float32)

    expected = jnp.array(x, copy=True)

    # Fast path (the actual module semantics): zero bytes moved.
    y_fast = jax.block_until_ready(identity_encoder(x))

    # Explicit Pallas kernel path: single HBM->HBM DMA copy.
    y_kernel = jax.block_until_ready(identity_encoder(x, materialize_copy=True))

    for y in (y_fast, y_kernel):
        assert y.shape == expected.shape, (y.shape, expected.shape)
        assert y.dtype == expected.dtype, (y.dtype, expected.dtype)
        assert bool(jnp.array_equal(y, expected)), "identity did not reproduce input"

    print("KERNEL_OK")
</pallas_src>

<mosaic_0001>
module attributes {stable_mosaic.version = 11 : i64} {
  func.func @_dma_identity_kernel(%arg0: memref<2x8x32xf32, #tpu.memory_space<any>>, %arg1: memref<2x8x32xf32, #tpu.memory_space<any>>, %arg2: memref<!tpu.dma_semaphore, #tpu.memory_space<semaphore_mem>>) attributes {dimension_semantics = [], scalar_prefetch = 0 : i64, scratch_operands = 1 : i64, tpu.core_type = #tpu.core_type<tc>} {
    tpu.enqueue_dma source(%arg0 : memref<2x8x32xf32, #tpu.memory_space<any>>) target(%arg1 : memref<2x8x32xf32, #tpu.memory_space<any>>) target_semaphore(%arg2 : memref<!tpu.dma_semaphore, #tpu.memory_space<semaphore_mem>>)
    tpu.wait_dma2 semaphore(%arg2 : memref<!tpu.dma_semaphore, #tpu.memory_space<semaphore_mem>>) src(%arg0 : memref<2x8x32xf32, #tpu.memory_space<any>>) dst(%arg1 : memref<2x8x32xf32, #tpu.memory_space<any>>)
    return
  }
}

</mosaic_0001>

<bundles_post_ra>
// kernel: tpu_custom_call.1
= control target key start
LH: loop header
LB: loop body
LE: loop exit
PB: predicated region body
PF: predicated region fallthrough
CT: control target
= control target key end

     0   :  { %s35_s6 = smov [#allocation2]   ;;  %s36_s7 = smov [#allocation3]   ;;  %s54_s0 = inlined_call_operand.hbm [shape: f32[2,8,32], index: 0, kind: input, shape index: {}]   ;;  %s55_s1 = inlined_call_operand.hbm [shape: f32[2,8,32], index: 1, kind: output, shape index: {}]  }
   0x1   :  { %s37_s8 = smov 0  }
   0x2   :  { %18 = dma.general %s54_s0, 256, %s55_s1, %s35_s6, %s36_s7, [#allocation4], %s37_s8, 0  }
   0x3   :  { %33 = dma.done.wait [#allocation2], 256 }
   0x4   :  { %34 = vsyncadd [#allocation2], 4294967040 }
   0x5   :  { %23 = vsyncmov [#allocation2] }
   0x8   :  { %s24_s13 = vpop.sfrf %23 }
   0x9   :  { %p29_p0 = scmp.ne.s32.totalorder %s24_s13, 0 }
   0xb   :  { %28 = shalt.err (%p29_p0)  }

</bundles_post_ra>
